<compile_context>
chip_gen: v6e
topology: v6e:2x2x1
jax: 0.10.0
libtpu: 0.0.40
codegen_flags: <defaults>
</compile_context>

<pallas_src>
import functools
import math

import jax
import jax.numpy as jnp
from jax.experimental import pallas as pl
from jax.experimental.pallas import tpu as pltpu


def _mamba_kernel_packed(b_ref, wmat_ref, exp_ref, e1_ref, e2_ref, o_ref, *,
                         blend_dtype):
    # b_ref:    (1, 1)      SMEM  -- Linear bias (scalar, f32)
    # wmat_ref: (dp, k)     VMEM  -- block-diagonal gate weight (f32)
    # exp_ref:  (k, dp)     VMEM  -- segment-expansion matrix (0/1, f32)
    # e1_ref:   (TILE, dp)  VMEM
    # e2_ref:   (TILE, dp)  VMEM
    # o_ref:    (TILE, dp)  VMEM
    e1 = e1_ref[...]
    e2 = e2_ref[...]

    # Per-segment gate logit on the MXU in f32: (TILE, dp) @ (dp, k) -> (TILE, k).
    logits = jax.lax.dot_general(
        e1.astype(jnp.float32), wmat_ref[...],
        dimension_numbers=(((1,), (0,)), ((), ())),
        preferred_element_type=jnp.float32,
    ) + b_ref[0, 0]
    g = jax.nn.sigmoid(logits)                                  # (TILE, k) f32

    # Expand the per-segment gate back to lane width: (TILE, k) @ (k, dp).
    g_full = jax.lax.dot_general(
        g, exp_ref[...],
        dimension_numbers=(((1,), (0,)), ((), ())),
        preferred_element_type=jnp.float32,
    ).astype(blend_dtype)                                       # (TILE, dp)

    e1b = e1.astype(blend_dtype)
    e2b = e2.astype(blend_dtype)
    # Blend: e2 + g*(e1 - e2)  (3 VALU ops, one fewer live full-tile temp).
    o_ref[...] = (e2b + g_full * (e1b - e2b)).astype(o_ref.dtype)


def _mamba_kernel_simple(b_ref, w_ref, e1_ref, e2_ref, o_ref, *, blend_dtype):
    # k == 1 (D multiple of 128): no expansion matmul, plain lane broadcast.
    # b_ref: (1, 1) SMEM;  w_ref: (dp, 1) VMEM f32;  e1/e2/o: (TILE, dp) VMEM.
    e1 = e1_ref[...]
    e2 = e2_ref[...]

    logits = jax.lax.dot_general(
        e1.astype(jnp.float32), w_ref[...],
        dimension_numbers=(((1,), (0,)), ((), ())),
        preferred_element_type=jnp.float32,
    ) + b_ref[0, 0]
    g = jax.nn.sigmoid(logits).astype(blend_dtype)              # (TILE, 1)

    e1b = e1.astype(blend_dtype)
    e2b = e2.astype(blend_dtype)
    o_ref[...] = (e2b + g * (e1b - e2b)).astype(o_ref.dtype)


def _vmem_capacity_bytes():
    try:
        cap = int(pltpu.get_tpu_info().vmem_capacity_bytes)
        if cap > 0:
            return cap
    except Exception:
        pass
    return 64 * 1024 * 1024  # conservative (v7x) fallback


def _round_up(x, m):
    return ((x + m - 1) // m) * m


def mamba_selection(e1, e2, weight, bias, *, tile_rows=None):
    """E1, E2: (..., D); weight: (D,); bias: scalar -> (..., D), dtype-preserving."""
    assert e1.shape == e2.shape
    orig_shape = e1.shape
    d = int(orig_shape[-1])
    dtype = e1.dtype
    itemsize = jnp.dtype(dtype).itemsize
    is_bf16 = jnp.dtype(dtype) == jnp.dtype(jnp.bfloat16)
    blend_dtype = jnp.bfloat16 if is_bf16 else jnp.float32

    e1_2d = e1.reshape(-1, d)
    e2_2d = e2.reshape(-1, d)
    n = int(e1_2d.shape[0])

    # --- lane packing: fold k rows so the packed width is a multiple of 128 --
    k = 128 // math.gcd(d, 128)
    dp = k * d  # packed row width (lane axis) = lcm(d, 128)

    # Pad N only to a multiple of k (needed for the (n,d)->(np,k*d) reshape).
    np_rows = -(-n // k)
    n_packed = np_rows * k
    if n_packed != n:
        pad = n_packed - n
        e1_2d = jnp.pad(e1_2d, ((0, pad), (0, 0)))
        e2_2d = jnp.pad(e2_2d, ((0, pad), (0, 0)))

    e1_p = e1_2d.reshape(np_rows, dp)   # free, row-major-contiguous reshape
    e2_p = e2_2d.reshape(np_rows, dp)

    # --- tile sizing --------------------------------------------------------
    sub = 8 if itemsize >= 4 else (16 if itemsize == 2 else 32)
    vmem_cap = _vmem_capacity_bytes()
    # 3 streams (E1, E2, out) x 2 pipeline buffers at input dtype, plus
    # ~3 tile-sized f32 in-kernel temporaries (f32 E1 for the gate matmul,
    # expanded gate, blend temp).
    bytes_per_row = dp * (6 * itemsize + 3 * 4)

    if tile_rows is None:
        budget = int(vmem_cap * 0.4)
        tile_rows = budget // bytes_per_row
        cap = 16384 if itemsize <= 2 else 8192
        tile_rows = max(sub, min(int(tile_rows), cap))
    else:
        tile_rows = max(1, int(tile_rows))

    if np_rows <= sub:
        # Tiny input: one block whose dims equal the full array dims.
        tile_rows = np_rows
    else:
        # Keep >= 4 grid steps when possible so v7x can shard rows across its
        # two TensorCores and the pipeline has DMAs to overlap.
        min_steps = 4
        tile_cap = _round_up(-(-np_rows // min_steps), sub)
        tile_rows = min(tile_rows, tile_cap)
        tile_rows = max(sub, (tile_rows // sub) * sub)
        tile_rows = min(tile_rows, _round_up(np_rows, sub))

    grid = (pl.cdiv(np_rows, tile_rows),)

    # Scoped VMEM limit covering the double-buffered streams + f32 temps.
    needed = tile_rows * bytes_per_row + (4 << 20)
    vmem_limit = int(min(max(needed, 32 << 20), int(vmem_cap * 0.85)))

    # --- gate parameters (kept in f32 for parity with the fp32 reference) ----
    w = weight.reshape(-1).astype(jnp.float32)                    # (D,)
    b_2d = jnp.asarray(bias, jnp.float32).reshape(1, 1)

    compiler_params = pltpu.CompilerParams(
        dimension_semantics=("parallel",),
        vmem_limit_bytes=vmem_limit,
    )

    row_spec = pl.BlockSpec((tile_rows, dp), lambda i: (i, 0))

    if k == 1:
        w_col = w.reshape(dp, 1)                                  # (dp, 1)
        out = pl.pallas_call(
            functools.partial(_mamba_kernel_simple, blend_dtype=blend_dtype),
            out_shape=jax.ShapeDtypeStruct((np_rows, dp), dtype),
            grid=grid,
            in_specs=[
                pl.BlockSpec(memory_space=pltpu.MemorySpace.SMEM),   # bias
                pl.BlockSpec((dp, 1), lambda i: (0, 0)),             # weight col
                row_spec,                                            # E1
                row_spec,                                            # E2
            ],
            out_specs=row_spec,
            compiler_params=compiler_params,
        )(b_2d, w_col, e1_p, e2_p)
    else:
        # Block-diagonal gate weight (dp, k) and 0/1 expansion matrix (k, dp).
        seg = jnp.arange(dp, dtype=jnp.int32) // d                   # (dp,)
        onehot = (seg[:, None] == jnp.arange(k, dtype=jnp.int32)[None, :]
                  ).astype(jnp.float32)                              # (dp, k)
        w_mat = jnp.tile(w, k)[:, None] * onehot                     # (dp, k) f32
        expand = onehot.T                                            # (k, dp) f32
        out = pl.pallas_call(
            functools.partial(_mamba_kernel_packed, blend_dtype=blend_dtype),
            out_shape=jax.ShapeDtypeStruct((np_rows, dp), dtype),
            grid=grid,
            in_specs=[
                pl.BlockSpec(memory_space=pltpu.MemorySpace.SMEM),   # bias
                pl.BlockSpec((dp, k), lambda i: (0, 0)),             # gate weight
                pl.BlockSpec((k, dp), lambda i: (0, 0)),             # expansion
                row_spec,                                            # E1
                row_spec,                                            # E2
            ],
            out_specs=row_spec,
            compiler_params=compiler_params,
        )(b_2d, w_mat, expand, e1_p, e2_p)

    out = out.reshape(n_packed, d)
    if n_packed != n:
        out = out[:n]
    return out.reshape(orig_shape)


if __name__ == "__main__":
    key = jax.random.PRNGKey(0)
    k1, k2, k3, k4 = jax.random.split(key, 4)

    batch, seq, embedding_dim = 2, 8, 32

    E1 = jax.random.normal(k1, (batch, seq, embedding_dim), dtype=jnp.float32)
    E2 = jax.random.normal(k2, (batch, seq, embedding_dim), dtype=jnp.float32)

    # Deterministic "Linear(embedding_dim, 1)" parameters (synthetic init).
    weight = jax.random.normal(k3, (embedding_dim,), dtype=jnp.float32) * 0.1
    bias = jax.random.normal(k4, (), dtype=jnp.float32) * 0.1

    out = mamba_selection(E1, E2, weight, bias)
    jax.block_until_ready(out)

    # Pure-JAX reference check.
    g_ref = jax.nn.sigmoid(jnp.einsum("bsd,d->bs", E1, weight)[..., None] + bias)
    ref = g_ref * E1 + (1.0 - g_ref) * E2
    assert out.dtype == E1.dtype, "dtype not preserved"
    assert jnp.allclose(out, ref, atol=1e-5, rtol=1e-5), "mismatch vs reference"

    print("KERNEL_OK")
</pallas_src>

<mosaic_0001>
module attributes {stable_mosaic.version = 11 : i64} {
  func.func @_mamba_kernel_packed(%arg0: i32, %arg1: memref<1x1xf32, #tpu.memory_space<smem>>, %arg2: memref<128x4xf32, #tpu.memory_space<vmem>>, %arg3: memref<4x128xf32, #tpu.memory_space<vmem>>, %arg4: memref<4x128xf32, #tpu.memory_space<vmem>>, %arg5: memref<4x128xf32, #tpu.memory_space<vmem>>, %arg6: memref<4x128xf32, #tpu.memory_space<vmem>>) attributes {dimension_semantics = [#tpu.dimension_semantics<parallel>], iteration_bounds = array<i64: 1>, scalar_prefetch = 0 : i64, scratch_operands = 0 : i64, tpu.core_type = #tpu.core_type<tc>, window_params = [{transform_indices = @transform_0, window_bounds = array<i64: 1, 1>}, {pipeline_mode = #tpu.pipeline_mode<synchronous>, transform_indices = @transform_1, window_bounds = array<i64: 128, 4>}, {pipeline_mode = #tpu.pipeline_mode<synchronous>, transform_indices = @transform_2, window_bounds = array<i64: 4, 128>}, {transform_indices = @transform_3, window_bounds = array<i64: 4, 128>}, {transform_indices = @transform_4, window_bounds = array<i64: 4, 128>}, {transform_indices = @transform_5, window_bounds = array<i64: 4, 128>}]} {
    %c0 = arith.constant 0 : index
    %c0_0 = arith.constant 0 : index
    %0 = vector.load %arg4[%c0, %c0_0] : memref<4x128xf32, #tpu.memory_space<vmem>>, vector<4x128xf32>
    %c0_1 = arith.constant 0 : index
    %c0_2 = arith.constant 0 : index
    %1 = vector.load %arg5[%c0_1, %c0_2] : memref<4x128xf32, #tpu.memory_space<vmem>>, vector<4x128xf32>
    %c0_3 = arith.constant 0 : index
    %c0_4 = arith.constant 0 : index
    %2 = vector.load %arg2[%c0_3, %c0_4] : memref<128x4xf32, #tpu.memory_space<vmem>>, vector<128x4xf32>
    %cst = arith.constant dense<0.000000e+00> : vector<4x4xf32>
    %3 = tpu.matmul %0, %2, %cst {dimension_numbers = #tpu.dot_dimension_numbers<[1], [0], [0], [1], [0, 0, 1, 1], [], []>} : vector<4x128xf32>, vector<128x4xf32>, vector<4x4xf32> -> vector<4x4xf32>
    %c0_5 = arith.constant 0 : index
    %c0_6 = arith.constant 0 : index
    %4 = memref.load %arg1[%c0_5, %c0_6] : memref<1x1xf32, #tpu.memory_space<smem>>
    %5 = vector.broadcast %4 : f32 to vector<4x4xf32>
    %6 = arith.addf %3, %5 : vector<4x4xf32>
    %7 = arith.negf %6 : vector<4x4xf32>
    %8 = math.exp %7 : vector<4x4xf32>
    %cst_7 = arith.constant 1.000000e+00 : f32
    %9 = vector.broadcast %cst_7 : f32 to vector<4x4xf32>
    %10 = arith.addf %9, %8 : vector<4x4xf32>
    %11 = arith.divf %9, %10 : vector<4x4xf32>
    %c0_8 = arith.constant 0 : index
    %c0_9 = arith.constant 0 : index
    %12 = vector.load %arg3[%c0_8, %c0_9] : memref<4x128xf32, #tpu.memory_space<vmem>>, vector<4x128xf32>
    %cst_10 = arith.constant dense<0.000000e+00> : vector<4x128xf32>
    %13 = tpu.matmul %11, %12, %cst_10 {dimension_numbers = #tpu.dot_dimension_numbers<[1], [0], [0], [1], [0, 0, 1, 1], [], []>} : vector<4x4xf32>, vector<4x128xf32>, vector<4x128xf32> -> vector<4x128xf32>
    %14 = arith.subf %0, %1 : vector<4x128xf32>
    %15 = arith.mulf %13, %14 : vector<4x128xf32>
    %16 = arith.addf %1, %15 : vector<4x128xf32>
    %c0_11 = arith.constant 0 : index
    %c0_12 = arith.constant 0 : index
    %17 = vector.load %arg6[%c0_11, %c0_12] : memref<4x128xf32, #tpu.memory_space<vmem>>, vector<4x128xf32>
    tpu.vector_store %arg6[%c0_11, %c0_12], %16 {strides = array<i32>} : memref<4x128xf32, #tpu.memory_space<vmem>>, vector<4x128xf32>,
    return
  }
  func.func @transform_0(%arg0: i32) -> (i32, i32) {
    %c0_i32 = arith.constant 0 : i32
    %c0_i32_0 = arith.constant 0 : i32
    %c0_i32_1 = arith.constant 0 : i32
    return %c0_i32, %c0_i32_0 : i32, i32
  }
  func.func @transform_1(%arg0: i32) -> (i32, i32) {
    %c0_i32 = arith.constant 0 : i32
    %c0_i32_0 = arith.constant 0 : i32
    %c0_i32_1 = arith.constant 0 : i32
    return %c0_i32, %c0_i32_0 : i32, i32
  }
  func.func @transform_2(%arg0: i32) -> (i32, i32) {
    %c0_i32 = arith.constant 0 : i32
    %c0_i32_0 = arith.constant 0 : i32
    %c0_i32_1 = arith.constant 0 : i32
    return %c0_i32, %c0_i32_0 : i32, i32
  }
  func.func @transform_3(%arg0: i32) -> (i32, i32) {
    %c0_i32 = arith.constant 0 : i32
    %c0_i32_0 = arith.constant 0 : i32
    return %arg0, %c0_i32 : i32, i32
  }
  func.func @transform_4(%arg0: i32) -> (i32, i32) {
    %c0_i32 = arith.constant 0 : i32
    %c0_i32_0 = arith.constant 0 : i32
    return %arg0, %c0_i32 : i32, i32
  }
  func.func @transform_5(%arg0: i32) -> (i32, i32) {
    %c0_i32 = arith.constant 0 : i32
    %c0_i32_0 = arith.constant 0 : i32
    return %arg0, %c0_i32 : i32, i32
  }
}

</mosaic_0001>

<bundles_post_ra>
// kernel: tpu_custom_call.1
= control target key start
LH: loop header
LB: loop body
LE: loop exit
PB: predicated region body
PF: predicated region fallthrough
CT: control target
= control target key end

     0   :  { %v306_v1 = vmov 0.0   ;;  %vm307_vm0 = vmmov 0   ;;  %s402_s0 = inlined_call_operand.<no memory space> [shape: f32[1,1], index: 0, kind: input, shape index: {}]   ;;  %s403_s1 = inlined_call_operand.vmem [shape: f32[128,4], index: 1, kind: input, shape index: {}]   ;;  %s404_s2 = inlined_call_operand.vmem [shape: f32[4,128], index: 2, kind: input, shape index: {}]   ;;  %s405_s3 = inlined_call_operand.vmem [shape: f32[4,128], index: 3, kind: input, shape index: {}]   ;;  %s406_s4 = inlined_call_operand.vmem [shape: f32[4,128], index: 4, kind: input, shape index: {}]   ;;  %s407_s5 = inlined_call_operand.hbm [shape: f32[4,128], index: 5, kind: output, shape index: {}]  }
   0x1   :  { %v39_v0 = vld [vmem:[%s403_s1 + $0x78] sm:$0xff]  ;;  %237 = vmatprep.subr.mxu0 %v306_v1  ;;  %v38_v2 = vld [vmem:[%s403_s1 + $0x70] sm:$0xff]  ;;  %269 = vmatprep.mubr.msk.f32.mxu0 %vm307_vm0, %v306_v1  ;;  %v37_v3 = vld [vmem:[%s403_s1 + $0x68] sm:$0xff] }
   0x2   :  { %238 = vmatpush3.msra.mxu0 %v39_v0  ;;  %272 = vmatprep.subr.mxu1 %v306_v1  ;;  %v36_v4 = vld [vmem:[%s403_s1 + $0x60] sm:$0xff] }
   0x3   :  { %239 = vmatprep.subr.mxu0 %v306_v1  ;;  %274 = vmatprep.mubr.msk.f32.mxu1 %vm307_vm0, %v306_v1 }
   0x4   :  { %240 = vmatpush3.msra.mxu0 %v38_v2 }
   0x5   :  { %241 = vmatprep.subr.mxu0 %v306_v1 }
   0x6   :  { %11 = vsyncpa [#allocation4], 0  ;;  %242 = vmatpush3.msra.mxu0 %v37_v3  ;;  %v35_v5 = vld [vmem:[%s403_s1 + $0x58] sm:$0xff]  ;;  %v34_v6 = vld [vmem:[%s403_s1 + $0x50] sm:$0xff]  ;;  %vm123_vm1 = vcmask 1043456   ;;  %v41_v19 = vstv %s402_s0  ;;  %vm119_vm2 = vcmask 31744  }
   0x7   :  { %243 = vmatprep.subr.mxu0 %v306_v1  ;;  %v33_v7 = vld [vmem:[%s403_s1 + $0x48] sm:$0xff]  ;;  %v32_v8 = vld [vmem:[%s403_s1 + $0x40] sm:$0xff]  ;;  %v31_v9 = vld [vmem:[%s403_s1 + $0x38] sm:$0xff] }
   0x8   :  { %244 = vmatpush3.msra.mxu0 %v36_v4  ;;  %v30_v10 = vld [vmem:[%s403_s1 + $0x30] sm:$0xff]  ;;  %v29_v11 = vld [vmem:[%s403_s1 + $0x28] sm:$0xff]  ;;  %v28_v12 = vld [vmem:[%s403_s1 + $0x20] sm:$0xff] }
   0x9   :  { %245 = vmatprep.subr.mxu0 %v306_v1  ;;  %v27_v13 = vld [vmem:[%s403_s1 + $0x18] sm:$0xff]  ;;  %v26_v14 = vld [vmem:[%s403_s1 + $0x10] sm:$0xff]  ;;  %v25_v15 = vld [vmem:[%s403_s1 + $0x8] sm:$0xff] }
   0xa   :  { %246 = vmatpush3.msra.mxu0 %v35_v5  ;;  %v24_v16 = vld [vmem:[%s403_s1] sm:$0xff] }
   0xb   :  { %247 = vmatprep.subr.mxu0 %v306_v1  ;;  %v22_v17 = vld [vmem:[%s405_s3] sm:$0xf] }
   0xc   :  { %248 = vmatpush3.msra.mxu0 %v34_v6  ;;  %v118_v18 = vld [vmem:[%s404_s2] sm:$0xf]  ;;  %s308_s2 = smov [#allocation3]  }
   0xd   :  { %249 = vmatprep.subr.mxu0 %v306_v1  ;;  %273 = vmatpush3.msk.msra.mxu1 %vm123_vm1, %v118_v18  ;;  %v23_v27 = vld [vmem:[%s406_s4] sm:$0xf]  ;;  %s207_s6 = sshll.u32 %s308_s2, 4  ;;  %s208_s6 = int_to_ptr.vmem [resolvable:$true] %s207_s6 }
   0xe   :  { %250 = vmatpush3.msra.mxu0 %v33_v7  ;;  %v197_v28 = vsub.f32 %v22_v17, %v23_v27  ;;  %s284_s0 = scalar_lea.vmem %s208_s6, 64  ;;  %p289_p1 = scmp.lt.s32.totalorder %s208_s6, %s208_s6 }
   0xf   :  { %251 = vmatprep.subr.mxu0 %v306_v1  ;;  %p285_p0 = scmp.ne.s32.totalorder %s208_s6, %s284_s0  ;;  %p290_p2 = scmp.lt.s32.totalorder %s284_s0, %s284_s0 }
  0x10   :  { %252 = vmatpush3.msra.mxu0 %v32_v8 }
  0x11   :  { %253 = vmatprep.subr.mxu0 %v306_v1  ;;  %p291_p3 = por %p290_p2, %p289_p1 }
  0x12   :  { %254 = vmatpush3.msra.mxu0 %v31_v9 }
  0x13   :  { %255 = vmatprep.subr.mxu0 %v306_v1  ;;  %p292_p4 = pnand %p291_p3, %p285_p0 }
  0x14   :  { %256 = vmatpush3.msra.mxu0 %v30_v10 }
  0x15   :  { %257 = vmatprep.subr.mxu0 %v306_v1 }
  0x16   :  { %258 = vmatpush3.msra.mxu0 %v29_v11 }
  0x17   :  { %259 = vmatprep.subr.mxu0 %v306_v1 }
  0x18   :  { %260 = vmatpush3.msra.mxu0 %v28_v12 }
  0x19   :  { %261 = vmatprep.subr.mxu0 %v306_v1 }
  0x1a   :  { %262 = vmatpush3.msra.mxu0 %v27_v13 }
  0x1b   :  { %263 = vmatprep.subr.mxu0 %v306_v1 }
  0x1c   :  { %264 = vmatpush3.msra.mxu0 %v26_v14 }
  0x1d   :  { %265 = vmatprep.subr.mxu0 %v306_v1 }
  0x1e   :  { %266 = vmatpush3.msra.mxu0 %v25_v15 }
  0x1f   :  { %267 = vmatprep.subr.mxu0 %v306_v1 }
  0x20   :  { %268 = vmatpush3.msra.mxu0 %v24_v16 }
  0x21   :  { %270 = vmatmul.mubr.f32.vlgmr.msra.gmra.mxu0 %v22_v17 }
  0xe1   :  { %v108_v20 = vpop.f32.mrf.mxu0 }
  0xe2   :  { %v109_v21 = vadd.f32 %v108_v20, %v41_v19 }
  0xe3   :  { %v271_v22 = vpop.f32.mrf.mxu0 }
  0xe4   :  { %v215_v23 = vmul.f32 -1.442695, %v109_v21 }
  0xe6   :  { %280 = vpow2.f32 %v215_v23 }
  0xf3   :  { %v281_v24 = vpop.eup %280 }
  0xf4   :  { %v115_v25 = vadd.f32 1.0, %v281_v24 }
  0xf6   :  { %282 = vrcp.f32 %v115_v25 }
 0x103   :  { %v283_v26 = vpop.eup %282 }
 0x104   :  { %275 = vmatmul.mubr.msk.f32.vlgmr.msra.gmra.mxu1 %vm119_vm2, %v283_v26 }
 0x1c4   :  { %v193_v29 = vpop.f32.mrf.mxu1 }
 0x1c5   :  { %v198_v30 = vmul.f32 %v197_v28, %v193_v29 }
 0x1c6   :  { %v276_v31 = vpop.f32.mrf.mxu1 }
 0x1c7   :  { %v199_v32 = vadd.f32 %v198_v30, %v23_v27 }
 0x1c9   :  { %200 = vst [vmem:[#allocation3] sm:$0xf] %v199_v32 }
 0x1ca   :  { %295 = shalt.err (!%p292_p4)
}
 0x1cb   :  { %210 = dma.vmem_to_hbm [thread:$0]  %s208_s6, 64, %s407_s5, [#allocation4]  }
 0x1cc   :  { %304 = dma.done.wait [#allocation4], 64  }
 0x1cd   :  { %305 = vsyncadd [#allocation4], 4294967232 }
 0x1ce   :  { %214 = vsyncpa [#allocation4], 1 }

</bundles_post_ra>
